<compile_context>
chip_gen: v6e
topology: v6e:2x2x1
jax: 0.10.0
libtpu: 0.0.40
codegen_flags: <defaults>
</compile_context>

<pallas_src>
import functools
import math

import jax
import jax.numpy as jnp
from jax import lax
from jax.experimental import pallas as pl
from jax.experimental.pallas import tpu as pltpu

OUT_LANES = 128   # lane width of the policy (act) log-prob slab
EVAL_LANES = 8    # evaluate() output lanes: [logp(a), value, entropy, 0...]
_WEIGHT_KEYS = ("w1", "b1", "w2", "b2", "w3", "b3", "w4", "b4")


# -----------------------------------------------------------------------------
# Small helpers
# -----------------------------------------------------------------------------
def _round_up(x, m):
    return ((x + m - 1) // m) * m


def _choose_tile(batch):
    """Batch tile: multiple of 16 (bf16 sublane packing), capped at 2048 rows
    to amortize per-grid-step overhead; when the batch is big enough, cap the
    tile so the grid has >= 2 'parallel' steps (v7x has 2 TensorCores)."""
    tb = min(2048, _round_up(batch, 16))
    if batch >= 32:
        tb = min(tb, _round_up(pl.cdiv(batch, 2), 16))
    return tb


def _pad_rows(x, rows):
    if x.shape[0] == rows:
        return x
    pad = ((0, rows - x.shape[0]),) + ((0, 0),) * (x.ndim - 1)
    return jnp.pad(x, pad)


def _const_spec(arr):
    # Constant index map: block index never changes across grid steps, so the
    # pipeline keeps the (tiny, ~100 KB) weights resident in VMEM.
    return pl.BlockSpec(arr.shape, lambda i: (0,) * arr.ndim)


# -----------------------------------------------------------------------------
# Shared in-kernel math
# -----------------------------------------------------------------------------
def _mlp_head(x_bf16, w1, b1, w2, b2, w3, b3, w4, b4):
    """Fused actor+critic MLP.  bf16 operands on the MXU, f32 accumulation.

    Returns y: (TB, OUT_LANES) f32 -- lanes [0, A) actor logits, lane A the
    critic value, remaining lanes exactly 0 (weights/biases zero-padded)."""
    h = jnp.tanh(jnp.dot(x_bf16, w1, preferred_element_type=jnp.float32) + b1)
    h = jnp.tanh(jnp.dot(h.astype(jnp.bfloat16), w2,
                         preferred_element_type=jnp.float32) + b2)
    h = jnp.tanh(jnp.dot(h.astype(jnp.bfloat16), w3,
                         preferred_element_type=jnp.float32) + b3)
    return jnp.dot(h.astype(jnp.bfloat16), w4,
                   preferred_element_type=jnp.float32) + b4


def _log_softmax_stats(y, action_dim):
    """Numerically stable log-softmax over the logit lanes only."""
    lane = lax.broadcasted_iota(jnp.int32, y.shape, 1)
    is_logit = lane < action_dim
    masked = jnp.where(is_logit, y, -jnp.inf)
    m = jnp.max(masked, axis=-1, keepdims=True)
    e = jnp.exp(masked - m)                       # exactly 0 off the logits
    s = jnp.sum(e, axis=-1, keepdims=True)
    log_probs = y - (m + jnp.log(s))              # valid on the logit lanes
    return lane, is_logit, log_probs, e, s


# -----------------------------------------------------------------------------
# Kernels
# -----------------------------------------------------------------------------
def _evaluate_kernel(state_ref, action_ref,
                     w1_ref, b1_ref, w2_ref, b2_ref, w3_ref, b3_ref,
                     w4_ref, b4_ref, out_ref, *, action_dim):
    y = _mlp_head(state_ref[...],
                  w1_ref[...], b1_ref[...], w2_ref[...], b2_ref[...],
                  w3_ref[...], b3_ref[...], w4_ref[...], b4_ref[...])
    lane, _, log_probs, e, s = _log_softmax_stats(y, action_dim)

    # In-kernel Categorical statistics + action gather (XLU lane reduces).
    a = action_ref[...]                                          # (TB, 1) i32
    logp_a = jnp.sum(jnp.where(lane == a, log_probs, 0.0),
                     axis=-1, keepdims=True)
    value = jnp.sum(jnp.where(lane == action_dim, y, 0.0),
                    axis=-1, keepdims=True)
    entropy = -jnp.sum(e * log_probs, axis=-1, keepdims=True) / s   # exact

    # Narrow packed output: lane 0 = logp(action), 1 = value, 2 = entropy.
    lane8 = lax.broadcasted_iota(jnp.int32, out_ref.shape, 1)
    out = jnp.where(lane8 == 0, logp_a, 0.0)
    out = jnp.where(lane8 == 1, value, out)
    out = jnp.where(lane8 == 2, entropy, out)
    out_ref[...] = out


def _policy_kernel(state_ref,
                   w1_ref, b1_ref, w2_ref, b2_ref, w3_ref, b3_ref,
                   w4_ref, b4_ref, out_ref, *, action_dim):
    y = _mlp_head(state_ref[...],
                  w1_ref[...], b1_ref[...], w2_ref[...], b2_ref[...],
                  w3_ref[...], b3_ref[...], w4_ref[...], b4_ref[...])
    _, is_logit, log_probs, _, _ = _log_softmax_stats(y, action_dim)
    # Full slab kept for sampling -> emit bf16 to halve the HBM writeback.
    out_ref[...] = jnp.where(is_logit, log_probs, 0.0).astype(jnp.bfloat16)


# -----------------------------------------------------------------------------
# Wrappers (batch-tiled pallas_call)
# -----------------------------------------------------------------------------
def evaluate(fused, state, action, action_dim):
    """Mirrors ActorCritic.evaluate(state, action):
       returns (log_prob(action) (B,), value (B,), entropy (B,))."""
    assert fused["action_dim"] == action_dim, "action_dim mismatch vs fuse_params"
    B, S = state.shape
    TB = _choose_tile(B)
    Bp = _round_up(B, TB)
    grid = (Bp // TB,)

    x = _pad_rows(state.astype(jnp.bfloat16), Bp)
    a = _pad_rows(action.astype(jnp.int32).reshape(B, 1), Bp)
    ws = [fused[k] for k in _WEIGHT_KEYS]

    in_specs = [pl.BlockSpec((TB, S), lambda i: (i, 0)),
                pl.BlockSpec((TB, 1), lambda i: (i, 0))]
    in_specs += [_const_spec(w) for w in ws]

    out = pl.pallas_call(
        functools.partial(_evaluate_kernel, action_dim=action_dim),
        out_shape=jax.ShapeDtypeStruct((Bp, EVAL_LANES), jnp.float32),
        grid=grid,
        in_specs=in_specs,
        out_specs=pl.BlockSpec((TB, EVAL_LANES), lambda i: (i, 0)),
        compiler_params=pltpu.CompilerParams(
            dimension_semantics=("parallel",)),
    )(x, a, *ws)

    return out[:B, 0], out[:B, 1], out[:B, 2]


def policy_log_probs(fused, state, action_dim):
    """Full (B, A) log-probability table (for act() / sampling)."""
    assert fused["action_dim"] == action_dim, "action_dim mismatch vs fuse_params"
    B, S = state.shape
    TB = _choose_tile(B)
    Bp = _round_up(B, TB)
    grid = (Bp // TB,)

    x = _pad_rows(state.astype(jnp.bfloat16), Bp)
    ws = [fused[k] for k in _WEIGHT_KEYS]

    in_specs = [pl.BlockSpec((TB, S), lambda i: (i, 0))]
    in_specs += [_const_spec(w) for w in ws]

    out = pl.pallas_call(
        functools.partial(_policy_kernel, action_dim=action_dim),
        out_shape=jax.ShapeDtypeStruct((Bp, OUT_LANES), jnp.bfloat16),
        grid=grid,
        in_specs=in_specs,
        out_specs=pl.BlockSpec((TB, OUT_LANES), lambda i: (i, 0)),
        compiler_params=pltpu.CompilerParams(
            dimension_semantics=("parallel",)),
    )(x, *ws)

    return out[:B, :action_dim].astype(jnp.float32)


def act(fused, state, key, action_dim):
    """Mirrors ActorCritic.act (sampling with a JAX key)."""
    # TODO(synk): Memory.{states,actions,logprobs}.append are host-side
    # side-effects of the PyTorch module and are left to the caller.
    log_probs = policy_log_probs(fused, state, action_dim)
    action = jax.random.categorical(key, log_probs, axis=-1)
    logp = jnp.take_along_axis(log_probs, action[:, None], axis=-1)[:, 0]
    return action, logp


# -----------------------------------------------------------------------------
# Parameter init (PyTorch-Linear-style uniform) + head fusion / bf16 packing
# -----------------------------------------------------------------------------
def _linear_init(key, fan_in, fan_out):
    kw, kb = jax.random.split(key)
    bound = 1.0 / math.sqrt(fan_in)
    w = jax.random.uniform(kw, (fan_in, fan_out), jnp.float32, -bound, bound)
    b = jax.random.uniform(kb, (1, fan_out), jnp.float32, -bound, bound)
    return w, b


def init_params(key, state_dim, action_dim, n_latent_var):
    keys = jax.random.split(key, 8)
    p = {}
    p["aw1"], p["ab1"] = _linear_init(keys[0], state_dim, n_latent_var)
    p["aw2"], p["ab2"] = _linear_init(keys[1], n_latent_var, n_latent_var)
    p["aw3"], p["ab3"] = _linear_init(keys[2], n_latent_var, n_latent_var)
    p["aw4"], p["ab4"] = _linear_init(keys[3], n_latent_var, action_dim)
    p["vw1"], p["vb1"] = _linear_init(keys[4], state_dim, n_latent_var)
    p["vw2"], p["vb2"] = _linear_init(keys[5], n_latent_var, n_latent_var)
    p["vw3"], p["vb3"] = _linear_init(keys[6], n_latent_var, n_latent_var)
    p["vw4"], p["vb4"] = _linear_init(keys[7], n_latent_var, 1)
    return p


def _blkdiag(a, b):
    top = jnp.concatenate([a, jnp.zeros((a.shape[0], b.shape[1]), a.dtype)], 1)
    bot = jnp.concatenate([jnp.zeros((b.shape[0], a.shape[1]), b.dtype), b], 1)
    return jnp.concatenate([top, bot], 0)


def _pad_to(x, rows, cols):
    return jnp.pad(x, ((0, rows - x.shape[0]), (0, cols - x.shape[1])))


def fuse_params(p, action_dim):
    """Fuse actor/critic heads into single-matmul-per-layer bf16 weights with
    the fused hidden width zero-padded to a full 128-lane MXU tile."""
    assert action_dim + 2 <= OUT_LANES
    S, H = p["aw1"].shape
    HID = _round_up(2 * H, 128)          # padded fused hidden width
    bf = jnp.bfloat16

    w1 = _pad_to(jnp.concatenate([p["aw1"], p["vw1"]], 1), S, HID)
    b1 = _pad_to(jnp.concatenate([p["ab1"], p["vb1"]], 1), 1, HID)
    w2 = _pad_to(_blkdiag(p["aw2"], p["vw2"]), HID, HID)
    b2 = _pad_to(jnp.concatenate([p["ab2"], p["vb2"]], 1), 1, HID)
    w3 = _pad_to(_blkdiag(p["aw3"], p["vw3"]), HID, HID)
    b3 = _pad_to(jnp.concatenate([p["ab3"], p["vb3"]], 1), 1, HID)
    w4 = _pad_to(_blkdiag(p["aw4"], p["vw4"]), HID, OUT_LANES)
    b4 = _pad_to(jnp.concatenate([p["ab4"], p["vb4"]], 1), 1, OUT_LANES)

    return dict(w1=w1.astype(bf), b1=b1, w2=w2.astype(bf), b2=b2,
                w3=w3.astype(bf), b3=b3, w4=w4.astype(bf), b4=b4,
                action_dim=action_dim)


# -----------------------------------------------------------------------------
# Pure-JAX reference (same bf16-operand / f32-accum matmul semantics)
# -----------------------------------------------------------------------------
def _reference_forward(params, state):
    bf = jnp.bfloat16

    def lin(x, w, b):
        return jnp.dot(x.astype(bf), w.astype(bf),
                       preferred_element_type=jnp.float32) + b

    h = jnp.tanh(lin(state, params["aw1"], params["ab1"]))
    h = jnp.tanh(lin(h, params["aw2"], params["ab2"]))
    h = jnp.tanh(lin(h, params["aw3"], params["ab3"]))
    logits = lin(h, params["aw4"], params["ab4"])
    log_probs = jax.nn.log_softmax(logits, axis=-1)
    entropy = -jnp.sum(jnp.exp(log_probs) * log_probs, axis=-1)

    g = jnp.tanh(lin(state, params["vw1"], params["vb1"]))
    g = jnp.tanh(lin(g, params["vw2"], params["vb2"]))
    g = jnp.tanh(lin(g, params["vw3"], params["vb3"]))
    value = lin(g, params["vw4"], params["vb4"])
    return log_probs, value, entropy


if __name__ == "__main__":
    # Small shapes consistent with the module's __init__.
    state_dim, action_dim, n_latent_var = 16, 8, 32
    batch = 8

    key = jax.random.PRNGKey(0)
    (k_params, k_state, k_action,
     k_sample, k_state2, k_action2) = jax.random.split(key, 6)

    params = init_params(k_params, state_dim, action_dim, n_latent_var)
    fused = fuse_params(params, action_dim)

    state = jax.random.normal(k_state, (batch, state_dim), jnp.float32)
    action = jax.random.randint(k_action, (batch,), 0, action_dim)

    # --- evaluate(): fused kernel, narrow (B, 8) f32 output ---------------
    logp, value, entropy = evaluate(fused, state, action, action_dim)
    jax.block_until_ready((logp, value, entropy))

    lp_r, v_r, ent_r = _reference_forward(params, state)
    logp_r = jnp.take_along_axis(lp_r, action[:, None].astype(jnp.int32), -1)[:, 0]
    assert logp.shape == (batch,)
    assert value.shape == (batch,)
    assert entropy.shape == (batch,)
    assert jnp.allclose(logp, logp_r, atol=2e-3, rtol=2e-2)
    assert jnp.allclose(value, v_r[:, 0], atol=2e-3, rtol=2e-2)
    assert jnp.allclose(entropy, ent_r, atol=2e-3, rtol=2e-2)
    assert bool(jnp.all(jnp.isfinite(logp)))
    assert bool(jnp.all(jnp.isfinite(entropy)))

    # --- act(): bf16 log-prob slab + categorical sampling -----------------
    lp_full = policy_log_probs(fused, state, action_dim)
    assert jnp.allclose(lp_full, lp_r, atol=5e-2, rtol=2e-2)       # bf16 slab
    assert jnp.allclose(jnp.sum(jnp.exp(lp_full), axis=-1), 1.0, atol=5e-2)
    a_s, logp_s = act(fused, state, k_sample, action_dim)
    assert a_s.shape == (batch,) and logp_s.shape == (batch,)
    assert bool(jnp.all((a_s >= 0) & (a_s < action_dim)))

    # --- multi-step grid (>= 2 'parallel' batch tiles) ---------------------
    batch2 = 40
    state2 = jax.random.normal(k_state2, (batch2, state_dim), jnp.float32)
    action2 = jax.random.randint(k_action2, (batch2,), 0, action_dim)
    logp2, value2, entropy2 = evaluate(fused, state2, action2, action_dim)
    jax.block_until_ready((logp2, value2, entropy2))
    lp2_r, v2_r, ent2_r = _reference_forward(params, state2)
    logp2_r = jnp.take_along_axis(
        lp2_r, action2[:, None].astype(jnp.int32), -1)[:, 0]
    assert jnp.allclose(logp2, logp2_r, atol=2e-3, rtol=2e-2)
    assert jnp.allclose(value2, v2_r[:, 0], atol=2e-3, rtol=2e-2)
    assert jnp.allclose(entropy2, ent2_r, atol=2e-3, rtol=2e-2)

    print("KERNEL_OK")
</pallas_src>

<mosaic_0001>
module attributes {stable_mosaic.version = 11 : i64} {
  func.func @_evaluate_kernel(%arg0: i32, %arg1: memref<16x16xbf16, #tpu.memory_space<vmem>>, %arg2: memref<16x1xi32, #tpu.memory_space<vmem>>, %arg3: memref<16x128xbf16, #tpu.memory_space<vmem>>, %arg4: memref<1x128xf32, #tpu.memory_space<vmem>>, %arg5: memref<128x128xbf16, #tpu.memory_space<vmem>>, %arg6: memref<1x128xf32, #tpu.memory_space<vmem>>, %arg7: memref<128x128xbf16, #tpu.memory_space<vmem>>, %arg8: memref<1x128xf32, #tpu.memory_space<vmem>>, %arg9: memref<128x128xbf16, #tpu.memory_space<vmem>>, %arg10: memref<1x128xf32, #tpu.memory_space<vmem>>, %arg11: memref<16x8xf32, #tpu.memory_space<vmem>>) attributes {dimension_semantics = [#tpu.dimension_semantics<parallel>], iteration_bounds = array<i64: 1>, scalar_prefetch = 0 : i64, scratch_operands = 0 : i64, tpu.core_type = #tpu.core_type<tc>, window_params = [{transform_indices = @transform_0, window_bounds = array<i64: 16, 16>}, {transform_indices = @transform_1, window_bounds = array<i64: 16, 1>}, {pipeline_mode = #tpu.pipeline_mode<synchronous>, transform_indices = @transform_2, window_bounds = array<i64: 16, 128>}, {pipeline_mode = #tpu.pipeline_mode<synchronous>, transform_indices = @transform_3, window_bounds = array<i64: 1, 128>}, {pipeline_mode = #tpu.pipeline_mode<synchronous>, transform_indices = @transform_4, window_bounds = array<i64: 128, 128>}, {pipeline_mode = #tpu.pipeline_mode<synchronous>, transform_indices = @transform_5, window_bounds = array<i64: 1, 128>}, {pipeline_mode = #tpu.pipeline_mode<synchronous>, transform_indices = @transform_6, window_bounds = array<i64: 128, 128>}, {pipeline_mode = #tpu.pipeline_mode<synchronous>, transform_indices = @transform_7, window_bounds = array<i64: 1, 128>}, {pipeline_mode = #tpu.pipeline_mode<synchronous>, transform_indices = @transform_8, window_bounds = array<i64: 128, 128>}, {pipeline_mode = #tpu.pipeline_mode<synchronous>, transform_indices = @transform_9, window_bounds = array<i64: 1, 128>}, {transform_indices = @transform_10, window_bounds = array<i64: 16, 8>}]} {
    %c0 = arith.constant 0 : index
    %c0_0 = arith.constant 0 : index
    %0 = vector.load %arg1[%c0, %c0_0] : memref<16x16xbf16, #tpu.memory_space<vmem>>, vector<16x16xbf16>
    %c0_1 = arith.constant 0 : index
    %c0_2 = arith.constant 0 : index
    %1 = vector.load %arg3[%c0_1, %c0_2] : memref<16x128xbf16, #tpu.memory_space<vmem>>, vector<16x128xbf16>
    %c0_3 = arith.constant 0 : index
    %c0_4 = arith.constant 0 : index
    %2 = vector.load %arg4[%c0_3, %c0_4] : memref<1x128xf32, #tpu.memory_space<vmem>>, vector<1x128xf32>
    %c0_5 = arith.constant 0 : index
    %c0_6 = arith.constant 0 : index
    %3 = vector.load %arg5[%c0_5, %c0_6] : memref<128x128xbf16, #tpu.memory_space<vmem>>, vector<128x128xbf16>
    %c0_7 = arith.constant 0 : index
    %c0_8 = arith.constant 0 : index
    %4 = vector.load %arg6[%c0_7, %c0_8] : memref<1x128xf32, #tpu.memory_space<vmem>>, vector<1x128xf32>
    %c0_9 = arith.constant 0 : index
    %c0_10 = arith.constant 0 : index
    %5 = vector.load %arg7[%c0_9, %c0_10] : memref<128x128xbf16, #tpu.memory_space<vmem>>, vector<128x128xbf16>
    %c0_11 = arith.constant 0 : index
    %c0_12 = arith.constant 0 : index
    %6 = vector.load %arg8[%c0_11, %c0_12] : memref<1x128xf32, #tpu.memory_space<vmem>>, vector<1x128xf32>
    %c0_13 = arith.constant 0 : index
    %c0_14 = arith.constant 0 : index
    %7 = vector.load %arg9[%c0_13, %c0_14] : memref<128x128xbf16, #tpu.memory_space<vmem>>, vector<128x128xbf16>
    %c0_15 = arith.constant 0 : index
    %c0_16 = arith.constant 0 : index
    %8 = vector.load %arg10[%c0_15, %c0_16] : memref<1x128xf32, #tpu.memory_space<vmem>>, vector<1x128xf32>
    %cst = arith.constant dense<0.000000e+00> : vector<16x128xf32>
    %9 = tpu.matmul %0, %1, %cst {dimension_numbers = #tpu.dot_dimension_numbers<[1], [0], [0], [1], [0, 0, 1, 1], [], []>} : vector<16x16xbf16>, vector<16x128xbf16>, vector<16x128xf32> -> vector<16x128xf32>
    %10 = vector.broadcast %2 : vector<1x128xf32> to vector<16x128xf32>
    %11 = arith.addf %9, %10 : vector<16x128xf32>
    %12 = math.tanh %11 : vector<16x128xf32>
    %13 = arith.truncf %12 : vector<16x128xf32> to vector<16x128xbf16>
    %cst_17 = arith.constant dense<0.000000e+00> : vector<16x128xf32>
    %14 = tpu.matmul %13, %3, %cst_17 {dimension_numbers = #tpu.dot_dimension_numbers<[1], [0], [0], [1], [0, 0, 1, 1], [], []>} : vector<16x128xbf16>, vector<128x128xbf16>, vector<16x128xf32> -> vector<16x128xf32>
    %15 = vector.broadcast %4 : vector<1x128xf32> to vector<16x128xf32>
    %16 = arith.addf %14, %15 : vector<16x128xf32>
    %17 = math.tanh %16 : vector<16x128xf32>
    %18 = arith.truncf %17 : vector<16x128xf32> to vector<16x128xbf16>
    %cst_18 = arith.constant dense<0.000000e+00> : vector<16x128xf32>
    %19 = tpu.matmul %18, %5, %cst_18 {dimension_numbers = #tpu.dot_dimension_numbers<[1], [0], [0], [1], [0, 0, 1, 1], [], []>} : vector<16x128xbf16>, vector<128x128xbf16>, vector<16x128xf32> -> vector<16x128xf32>
    %20 = vector.broadcast %6 : vector<1x128xf32> to vector<16x128xf32>
    %21 = arith.addf %19, %20 : vector<16x128xf32>
    %22 = math.tanh %21 : vector<16x128xf32>
    %23 = arith.truncf %22 : vector<16x128xf32> to vector<16x128xbf16>
    %cst_19 = arith.constant dense<0.000000e+00> : vector<16x128xf32>
    %24 = tpu.matmul %23, %7, %cst_19 {dimension_numbers = #tpu.dot_dimension_numbers<[1], [0], [0], [1], [0, 0, 1, 1], [], []>} : vector<16x128xbf16>, vector<128x128xbf16>, vector<16x128xf32> -> vector<16x128xf32>
    %25 = vector.broadcast %8 : vector<1x128xf32> to vector<16x128xf32>
    %26 = arith.addf %24, %25 : vector<16x128xf32>
    %27 = tpu.iota {dimensions = array<i32: 1>} : vector<16x128xi32>
    %c8_i32 = arith.constant 8 : i32
    %28 = vector.broadcast %c8_i32 : i32 to vector<16x128xi32>
    %29 = arith.cmpi slt, %27, %28 : vector<16x128xi32>
    %cst_20 = arith.constant 0xFF800000 : f32
    %30 = vector.broadcast %cst_20 : f32 to vector<16x128xf32>
    %31 = arith.select %29, %26, %30 : vector<16x128xi1>, vector<16x128xf32>
    %cst_21 = arith.constant dense<0xFF800000> : vector<16xf32>
    %32 = vector.multi_reduction <maximumf>, %31, %cst_21 [1] : vector<16x128xf32> to vector<16xf32>
    %33 = vector.shape_cast %32 : vector<16xf32> to vector<16x1xf32>
    %34 = vector.broadcast %33 : vector<16x1xf32> to vector<16x128xf32>
    %35 = arith.subf %31, %34 : vector<16x128xf32>
    %36 = math.exp %35 : vector<16x128xf32>
    %cst_22 = arith.constant dense<0.000000e+00> : vector<16xf32>
    %37 = vector.multi_reduction <add>, %36, %cst_22 [1] : vector<16x128xf32> to vector<16xf32>
    %38 = vector.shape_cast %37 : vector<16xf32> to vector<16x1xf32>
    %39 = math.log %38 : vector<16x1xf32>
    %40 = arith.addf %33, %39 : vector<16x1xf32>
    %41 = vector.broadcast %40 : vector<16x1xf32> to vector<16x128xf32>
    %42 = arith.subf %26, %41 : vector<16x128xf32>
    %c0_23 = arith.constant 0 : index
    %c0_24 = arith.constant 0 : index
    %43 = vector.load %arg2[%c0_23, %c0_24] : memref<16x1xi32, #tpu.memory_space<vmem>>, vector<16x1xi32>
    %44 = vector.broadcast %43 : vector<16x1xi32> to vector<16x128xi32>
    %45 = arith.cmpi eq, %27, %44 : vector<16x128xi32>
    %cst_25 = arith.constant 0.000000e+00 : f32
    %46 = vector.broadcast %cst_25 : f32 to vector<16x128xf32>
    %47 = arith.select %45, %42, %46 : vector<16x128xi1>, vector<16x128xf32>
    %cst_26 = arith.constant dense<0.000000e+00> : vector<16xf32>
    %48 = vector.multi_reduction <add>, %47, %cst_26 [1] : vector<16x128xf32> to vector<16xf32>
    %49 = vector.shape_cast %48 : vector<16xf32> to vector<16x1xf32>
    %c8_i32_27 = arith.constant 8 : i32
    %50 = vector.broadcast %c8_i32_27 : i32 to vector<16x128xi32>
    %51 = arith.cmpi eq, %27, %50 : vector<16x128xi32>
    %cst_28 = arith.constant 0.000000e+00 : f32
    %52 = vector.broadcast %cst_28 : f32 to vector<16x128xf32>
    %53 = arith.select %51, %26, %52 : vector<16x128xi1>, vector<16x128xf32>
    %cst_29 = arith.constant dense<0.000000e+00> : vector<16xf32>
    %54 = vector.multi_reduction <add>, %53, %cst_29 [1] : vector<16x128xf32> to vector<16xf32>
    %55 = vector.shape_cast %54 : vector<16xf32> to vector<16x1xf32>
    %56 = arith.mulf %36, %42 : vector<16x128xf32>
    %cst_30 = arith.constant dense<0.000000e+00> : vector<16xf32>
    %57 = vector.multi_reduction <add>, %56, %cst_30 [1] : vector<16x128xf32> to vector<16xf32>
    %58 = vector.shape_cast %57 : vector<16xf32> to vector<16x1xf32>
    %cst_31 = arith.constant 0.000000e+00 : f32
    %59 = vector.broadcast %cst_31 : f32 to vector<16x1xf32>
    %60 = arith.subf %59, %58 : vector<16x1xf32>
    %61 = arith.divf %60, %38 : vector<16x1xf32>
    %62 = tpu.iota {dimensions = array<i32: 1>} : vector<16x8xi32>
    %c0_i32 = arith.constant 0 : i32
    %63 = vector.broadcast %c0_i32 : i32 to vector<16x8xi32>
    %64 = arith.cmpi eq, %62, %63 : vector<16x8xi32>
    %cst_32 = arith.constant 0.000000e+00 : f32
    %65 = vector.shape_cast %49 : vector<16x1xf32> to vector<16x1xf32>
    %66 = vector.broadcast %65 : vector<16x1xf32> to vector<16x8xf32>
    %67 = vector.broadcast %cst_32 : f32 to vector<16x8xf32>
    %68 = arith.select %64, %66, %67 : vector<16x8xi1>, vector<16x8xf32>
    %c1_i32 = arith.constant 1 : i32
    %69 = vector.broadcast %c1_i32 : i32 to vector<16x8xi32>
    %70 = arith.cmpi eq, %62, %69 : vector<16x8xi32>
    %71 = vector.shape_cast %55 : vector<16x1xf32> to vector<16x1xf32>
    %72 = vector.broadcast %71 : vector<16x1xf32> to vector<16x8xf32>
    %73 = arith.select %70, %72, %68 : vector<16x8xi1>, vector<16x8xf32>
    %c2_i32 = arith.constant 2 : i32
    %74 = vector.broadcast %c2_i32 : i32 to vector<16x8xi32>
    %75 = arith.cmpi eq, %62, %74 : vector<16x8xi32>
    %76 = vector.shape_cast %61 : vector<16x1xf32> to vector<16x1xf32>
    %77 = vector.broadcast %76 : vector<16x1xf32> to vector<16x8xf32>
    %78 = arith.select %75, %77, %73 : vector<16x8xi1>, vector<16x8xf32>
    %c0_33 = arith.constant 0 : index
    %c0_34 = arith.constant 0 : index
    %79 = vector.load %arg11[%c0_33, %c0_34] : memref<16x8xf32, #tpu.memory_space<vmem>>, vector<16x8xf32>
    tpu.vector_store %arg11[%c0_33, %c0_34], %78 {strides = array<i32>} : memref<16x8xf32, #tpu.memory_space<vmem>>, vector<16x8xf32>,
    return
  }
  func.func @transform_0(%arg0: i32) -> (i32, i32) {
    %c0_i32 = arith.constant 0 : i32
    %c0_i32_0 = arith.constant 0 : i32
    return %arg0, %c0_i32 : i32, i32
  }
  func.func @transform_1(%arg0: i32) -> (i32, i32) {
    %c0_i32 = arith.constant 0 : i32
    %c0_i32_0 = arith.constant 0 : i32
    return %arg0, %c0_i32 : i32, i32
  }
  func.func @transform_2(%arg0: i32) -> (i32, i32) {
    %c0_i32 = arith.constant 0 : i32
    %c0_i32_0 = arith.constant 0 : i32
    %c0_i32_1 = arith.constant 0 : i32
    return %c0_i32, %c0_i32_0 : i32, i32
  }
  func.func @transform_3(%arg0: i32) -> (i32, i32) {
    %c0_i32 = arith.constant 0 : i32
    %c0_i32_0 = arith.constant 0 : i32
    %c0_i32_1 = arith.constant 0 : i32
    return %c0_i32, %c0_i32_0 : i32, i32
  }
  func.func @transform_4(%arg0: i32) -> (i32, i32) {
    %c0_i32 = arith.constant 0 : i32
    %c0_i32_0 = arith.constant 0 : i32
    %c0_i32_1 = arith.constant 0 : i32
    return %c0_i32, %c0_i32_0 : i32, i32
  }
  func.func @transform_5(%arg0: i32) -> (i32, i32) {
    %c0_i32 = arith.constant 0 : i32
    %c0_i32_0 = arith.constant 0 : i32
    %c0_i32_1 = arith.constant 0 : i32
    return %c0_i32, %c0_i32_0 : i32, i32
  }
  func.func @transform_6(%arg0: i32) -> (i32, i32) {
    %c0_i32 = arith.constant 0 : i32
    %c0_i32_0 = arith.constant 0 : i32
    %c0_i32_1 = arith.constant 0 : i32
    return %c0_i32, %c0_i32_0 : i32, i32
  }
  func.func @transform_7(%arg0: i32) -> (i32, i32) {
    %c0_i32 = arith.constant 0 : i32
    %c0_i32_0 = arith.constant 0 : i32
    %c0_i32_1 = arith.constant 0 : i32
    return %c0_i32, %c0_i32_0 : i32, i32
  }
  func.func @transform_8(%arg0: i32) -> (i32, i32) {
    %c0_i32 = arith.constant 0 : i32
    %c0_i32_0 = arith.constant 0 : i32
    %c0_i32_1 = arith.constant 0 : i32
    return %c0_i32, %c0_i32_0 : i32, i32
  }
  func.func @transform_9(%arg0: i32) -> (i32, i32) {
    %c0_i32 = arith.constant 0 : i32
    %c0_i32_0 = arith.constant 0 : i32
    %c0_i32_1 = arith.constant 0 : i32
    return %c0_i32, %c0_i32_0 : i32, i32
  }
  func.func @transform_10(%arg0: i32) -> (i32, i32) {
    %c0_i32 = arith.constant 0 : i32
    %c0_i32_0 = arith.constant 0 : i32
    return %arg0, %c0_i32 : i32, i32
  }
}

</mosaic_0001>

<bundles_post_ra>
// kernel: tpu_custom_call.1
= control target key start
LH: loop header
LB: loop body
LE: loop exit
PB: predicated region body
PF: predicated region fallthrough
CT: control target
= control target key end

     0   :  { %15 = vsyncpa [#allocation3], 0  ;;  %s963_s0 = inlined_call_operand.vmem [shape: bf16[16,16], index: 0, kind: input, shape index: {}]   ;;  %s964_s1 = inlined_call_operand.vmem [shape: s32[16,1], index: 1, kind: input, shape index: {}]   ;;  %s965_s2 = inlined_call_operand.vmem [shape: bf16[16,128], index: 2, kind: input, shape index: {}]   ;;  %s966_s3 = inlined_call_operand.vmem [shape: f32[1,128], index: 3, kind: input, shape index: {}]   ;;  %s967_s4 = inlined_call_operand.hbm [shape: bf16[128,128], index: 4, kind: input, shape index: {}]   ;;  %s968_s5 = inlined_call_operand.vmem [shape: f32[1,128], index: 5, kind: input, shape index: {}]   ;;  %s969_s6 = inlined_call_operand.hbm [shape: bf16[128,128], index: 6, kind: input, shape index: {}]   ;;  %s970_s7 = inlined_call_operand.vmem [shape: f32[1,128], index: 7, kind: input, shape index: {}]   ;;  %s971_s8 = inlined_call_operand.hbm [shape: bf16[128,128], index: 8, kind: input, shape index: {}]   ;;  %s972_s9 = inlined_call_operand.vmem [shape: f32[1,128], index: 9, kind: input, shape index: {}]   ;;  %s973_s10 = inlined_call_operand.vmem [shape: f32[16,8], index: 10, kind: output, shape index: {}]  }
   0x1   :  { %16 = vsyncpa [#allocation5], 0  ;;  %s819_s13 = smov [#allocation4]   ;;  %s820_s15 = smov [#allocation2]  }
   0x2   :  { %s44_s14 = sshll.u32 %s819_s13, 4  ;;  %s30_s16 = sshll.u32 %s820_s15, 4  ;;  %s45_s14 = int_to_ptr.vmem [resolvable:$true] %s44_s14  ;;  %s31_s16 = int_to_ptr.vmem [resolvable:$true] %s30_s16 }
   0x3   :  { %s763_s17 = scalar_lea.vmem %s45_s14, 1024  ;;  %p768_p1 = scmp.lt.s32.totalorder %s45_s14, %s45_s14 }
   0x4   :  { %p764_p0 = scmp.ne.s32.totalorder %s45_s14, %s763_s17  ;;  %p769_p2 = scmp.lt.s32.totalorder %s763_s17, %s763_s17 }
   0x6   :  { %p770_p3 = por %p769_p2, %p768_p1 }
   0x8   :  { %p771_p4 = pnand %p770_p3, %p764_p0 }
   0xa   :  { %774 = shalt.err (!%p771_p4)
}
   0xb   :  { %s821_s18 = smov 64   ;;  %s822_s19 = smov 4  }
   0xc   :  { %50 = dma.hbm_to_vmem [thread:$0]  %s969_s6, 1024, %s45_s14, [#allocation5], %s821_s18, %s821_s18, %s822_s19  }
   0xd   :  { %s783_s22 = scalar_lea.vmem %s31_s16, 1024  ;;  %p788_p6 = scmp.lt.s32.totalorder %s31_s16, %s31_s16 }
   0xe   :  { %p784_p5 = scmp.ne.s32.totalorder %s31_s16, %s783_s22  ;;  %p789_p7 = scmp.lt.s32.totalorder %s783_s22, %s783_s22 }
  0x10   :  { %p790_p8 = por %p789_p7, %p788_p6 }
  0x12   :  { %p791_p9 = pnand %p790_p8, %p784_p5 }
  0x14   :  { %794 = shalt.err (!%p791_p9)
}
  0x15   :  { %36 = dma.hbm_to_vmem [thread:$0]  %s967_s4, 1024, %s31_s16, [#allocation3], %s821_s18, %s821_s18, %s822_s19  }
  0x16   :  { %s823_s25 = smov [#allocation6]  }
  0x17   :  { %s58_s26 = sshll.u32 %s823_s25, 4  ;;  %s59_s26 = int_to_ptr.vmem [resolvable:$true] %s58_s26 }
  0x18   :  { %s803_s27 = scalar_lea.vmem %s59_s26, 1024  ;;  %p808_p11 = scmp.lt.s32.totalorder %s59_s26, %s59_s26 }
  0x19   :  { %p804_p10 = scmp.ne.s32.totalorder %s59_s26, %s803_s27  ;;  %p809_p12 = scmp.lt.s32.totalorder %s803_s27, %s803_s27 }
  0x1b   :  { %p810_p13 = por %p809_p12, %p808_p11 }
  0x1d   :  { %p811_p0 = pnand %p810_p13, %p804_p10 }
  0x1f   :  { %814 = shalt.err (!%p811_p0)
}
  0x20   :  { %64 = dma.hbm_to_vmem [thread:$0]  %s971_s8, 1024, %s59_s26, [#allocation5], %s821_s18, %s821_s18, %s822_s19  }
  0x21   :  { %815 = dma.done.wait [#allocation3], 1024  }
  0x22   :  { %816 = vsyncadd [#allocation3], 4294966272 }
  0x23   :  { %817 = dma.done.wait [#allocation5], 2048  }
  0x24   :  { %818 = vsyncadd [#allocation5], 4294965248  ;;  %v824_v0 = vmov 0.0   ;;  %vm825_vm0 = vmmov 0   ;;  %v705_v1 = vld [vmem:[%s965_s2] sm:$0xff]   ;;  %vm150_vm1 = vcmask 130048   ;;  %v489_v57 = vlaneseq }
  0x25   :  { %629 = vmatprep.subr.bf16.mxu0 %v824_v0  ;;  %631 = vmatprep.mubr.msk.bf16.mxu0 %vm825_vm0, %v824_v0  ;;  %v706_v2 = vld [vmem:[%s963_s0] sm:$0xff]   ;;  %v707_v3 = vld [vmem:[#allocation2 + $0x38] sm:$0xff]   ;;  %v708_v4 = vld [vmem:[#allocation2 + $0x30] sm:$0xff]   ;;  %vm560_vm9 = vcmask 64512  }
  0x26   :  { %635 = vmatprep.subr.bf16.mxu1 %v824_v0  ;;  %651 = vmatprep.mubr.msk.bf16.mxu1 %vm825_vm0, %v824_v0  ;;  %v709_v5 = vld [vmem:[#allocation2 + $0x28] sm:$0xff]   ;;  %v710_v6 = vld [vmem:[#allocation2 + $0x20] sm:$0xff]   ;;  %v711_v7 = vld [vmem:[#allocation2 + $0x18] sm:$0xff]   ;;  %v939_v58 = vand.u32 127, %v489_v57 }
  0x27   :  { %630 = vmatpush3.bf16.msra.mxu0 %v705_v1  ;;  %636 = vmatpush3.bf16.msra.mxu1 %v707_v3  ;;  %v712_v8 = vld [vmem:[#allocation2 + $0x10] sm:$0xff]   ;;  %v713_v9 = vld [vmem:[#allocation2 + $0x8] sm:$0xff]   ;;  %v714_v10 = vld [vmem:[#allocation2] sm:$0xff]  }
  0x28   :  { %655 = vmatprep.subr.bf16.mxu0 %v824_v0  ;;  %637 = vmatprep.subr.bf16.mxu1 %v824_v0  ;;  %v715_v11 = vld [vmem:[#allocation4 + $0x38] sm:$0xff]   ;;  %v716_v12 = vld [vmem:[#allocation4 + $0x30] sm:$0xff]   ;;  %v569_v13 = vld [vmem:[%s966_s3] ss:$0 sm:$0xff]  ;;  %vm491_vm2 = vcmp.lt.s32.totalorder %v939_v58, 8  ;;  %vm532_vm5 = vcmp.eq.s32.totalorder %v939_v58, 8 }
  0x29   :  { %v717_v23 = vld [vmem:[#allocation4 + $0x28] sm:$0xff]   ;;  %v718_v24 = vld [vmem:[#allocation4 + $0x20] sm:$0xff]   ;;  %v719_v25 = vld [vmem:[#allocation4 + $0x18] sm:$0xff]   ;;  %vm551_vm6 = vcmp.eq.s32.totalorder %v939_v58, 0  ;;  %vm554_vm7 = vcmp.eq.s32.totalorder %v939_v58, 1  ;;  %vm557_vm8 = vcmp.eq.s32.totalorder %v939_v58, 2 }
  0x2a   :  { %632 = vmatmul.mubr.msk.bf16.vlgmr.msra.gmra.mxu0 %vm150_vm1, %v706_v2  ;;  %v720_v26 = vld [vmem:[#allocation4 + $0x10] sm:$0xff]   ;;  %v721_v27 = vld [vmem:[#allocation4 + $0x8] sm:$0xff]   ;;  %v722_v28 = vld [vmem:[#allocation4] sm:$0xff]  }
  0x2b   :  { %671 = vmatprep.mubr.msk.bf16.mxu0 %vm825_vm0, %v824_v0  ;;  %638 = vmatpush3.bf16.msra.mxu1 %v708_v4  ;;  %v723_v29 = vld [vmem:[#allocation6 + $0x38] sm:$0xff]   ;;  %v724_v30 = vld [vmem:[#allocation6 + $0x30] sm:$0xff]   ;;  %v573_v31 = vld [vmem:[%s968_s5] ss:$0 sm:$0xff] }
  0x2c   :  { %639 = vmatprep.subr.bf16.mxu1 %v824_v0  ;;  %656 = vmatpush3.bf16.msra.mxu0 %v715_v11  ;;  %v725_v41 = vld [vmem:[#allocation6 + $0x28] sm:$0xff]   ;;  %v726_v42 = vld [vmem:[#allocation6 + $0x20] sm:$0xff]   ;;  %v727_v43 = vld [vmem:[#allocation6 + $0x18] sm:$0xff]  }
  0x2d   :  { %657 = vmatprep.subr.bf16.mxu0 %v824_v0  ;;  %v728_v44 = vld [vmem:[#allocation6 + $0x10] sm:$0xff]   ;;  %v729_v45 = vld [vmem:[#allocation6 + $0x8] sm:$0xff]   ;;  %v730_v46 = vld [vmem:[#allocation6] sm:$0xff]  }
  0x2e   :  { %v582_v47 = vld [vmem:[%s970_s7] ss:$0 sm:$0xff] }
  0x2f   :  { %640 = vmatpush3.bf16.msra.mxu1 %v709_v5  ;;  %v591_v59 = vld [vmem:[%s972_s9] ss:$0 sm:$0xff]  ;;  %v826_v5 = vmov 0  }
  0x30   :  { %641 = vmatprep.subr.bf16.mxu1 %v824_v0  ;;  %658 = vmatpush3.bf16.msra.mxu0 %v716_v12  ;;  %v516_v4 = vld [vmem:[%s964_s1] sm:$0xff] }
  0x31   :  { %659 = vmatprep.subr.bf16.mxu0 %v824_v0  ;;  %703 = vset.pattern.permute.xlu0 %v826_v5 }
  0x32   :  { %704 = vset.pattern.permute.xlu1 %v826_v5 }
  0x33   :  { %642 = vmatpush3.bf16.msra.mxu1 %v710_v6 }
  0x34   :  { %643 = vmatprep.subr.bf16.mxu1 %v824_v0  ;;  %660 = vmatpush3.bf16.msra.mxu0 %v717_v23 }
  0x35   :  { %661 = vmatprep.subr.bf16.mxu0 %v824_v0 }
  0x37   :  { %644 = vmatpush3.bf16.msra.mxu1 %v711_v7 }
  0x38   :  { %645 = vmatprep.subr.bf16.mxu1 %v824_v0  ;;  %662 = vmatpush3.bf16.msra.mxu0 %v718_v24 }
  0x39   :  { %663 = vmatprep.subr.bf16.mxu0 %v824_v0 }
  0x3b   :  { %646 = vmatpush3.bf16.msra.mxu1 %v712_v8 }
  0x3c   :  { %647 = vmatprep.subr.bf16.mxu1 %v824_v0  ;;  %664 = vmatpush3.bf16.msra.mxu0 %v719_v25 }
  0x3d   :  { %665 = vmatprep.subr.bf16.mxu0 %v824_v0 }
  0x3f   :  { %648 = vmatpush3.bf16.msra.mxu1 %v713_v9 }
  0x40   :  { %649 = vmatprep.subr.bf16.mxu1 %v824_v0  ;;  %666 = vmatpush3.bf16.msra.mxu0 %v720_v26 }
  0x41   :  { %667 = vmatprep.subr.bf16.mxu0 %v824_v0 }
  0x43   :  { %650 = vmatpush3.bf16.msra.mxu1 %v714_v10 }
  0x44   :  { %675 = vmatprep.subr.bf16.mxu1 %v824_v0  ;;  %668 = vmatpush3.bf16.msra.mxu0 %v721_v27 }
  0x45   :  { %669 = vmatprep.subr.bf16.mxu0 %v824_v0 }
  0x48   :  { %670 = vmatpush3.bf16.msra.mxu0 %v722_v28 }
  0xea   :  { %v188_v14 = vpop.f32.mrf.mxu0 }
  0xeb   :  { %v189_v15 = vadd.f32 %v569_v13, %v188_v14  ;;  %v517_v14 = vld [vmem:[%s964_s1 + $0x8] sm:$0xff] }
  0xec   :  { %v633_v16 = vpop.f32.mrf.mxu0 }
  0xed   :  { %731 = vtanh.f32 %v189_v15 }
  0xee   :  { %v191_v17 = vpop.f32.mrf.mxu0 }
  0xef   :  { %v192_v18 = vadd.f32 %v569_v13, %v191_v17 }
  0xf0   :  { %v634_v19 = vpop.f32.mrf.mxu0 }
  0xf1   :  { %733 = vtanh.f32 %v192_v18 }
  0xfa   :  { %v732_v20 = vpop.eup %731 }
  0xfe   :  { %v734_v21 = vpop.eup %733 }
  0xff   :  { %v197_v22 = vpack.c.bf16 %v734_v21, %v732_v20 }
 0x101   :  { %652 = vmatmul.mubr.bf16.vlgmr.msra.gmra.mxu1 %v197_v22 }
 0x102   :  { %691 = vmatprep.mubr.msk.bf16.mxu1 %vm825_vm0, %v824_v0  ;;  %676 = vmatpush3.bf16.msra.mxu1 %v723_v29 }
 0x103   :  { %677 = vmatprep.subr.bf16.mxu1 %v824_v0 }
 0x106   :  { %678 = vmatpush3.bf16.msra.mxu1 %v724_v30 }
 0x107   :  { %679 = vmatprep.subr.bf16.mxu1 %v824_v0 }
 0x10a   :  { %680 = vmatpush3.bf16.msra.mxu1 %v725_v41 }
 0x10b   :  { %681 = vmatprep.subr.bf16.mxu1 %v824_v0 }
 0x10e   :  { %682 = vmatpush3.bf16.msra.mxu1 %v726_v42 }
 0x10f   :  { %683 = vmatprep.subr.bf16.mxu1 %v824_v0 }
 0x112   :  { %684 = vmatpush3.bf16.msra.mxu1 %v727_v43 }
 0x113   :  { %685 = vmatprep.subr.bf16.mxu1 %v824_v0 }
 0x116   :  { %686 = vmatpush3.bf16.msra.mxu1 %v728_v44 }
 0x117   :  { %687 = vmatprep.subr.bf16.mxu1 %v824_v0 }
 0x11a   :  { %688 = vmatpush3.bf16.msra.mxu1 %v729_v45 }
 0x11b   :  { %689 = vmatprep.subr.bf16.mxu1 %v824_v0 }
 0x11e   :  { %690 = vmatpush3.bf16.msra.mxu1 %v730_v46 }
 0x1c1   :  { %v286_v32 = vpop.f32.mrf.mxu1 }
 0x1c2   :  { %v287_v33 = vadd.f32 %v573_v31, %v286_v32 }
 0x1c3   :  { %v653_v34 = vpop.f32.mrf.mxu1 }
 0x1c4   :  { %735 = vtanh.f32 %v287_v33 }
 0x1c5   :  { %v289_v35 = vpop.f32.mrf.mxu1 }
 0x1c6   :  { %v290_v36 = vadd.f32 %v573_v31, %v289_v35 }
 0x1c7   :  { %v654_v37 = vpop.f32.mrf.mxu1 }
 0x1c8   :  { %737 = vtanh.f32 %v290_v36 }
 0x1d1   :  { %v736_v38 = vpop.eup %735 }
 0x1d5   :  { %v738_v39 = vpop.eup %737 }
 0x1d6   :  { %v295_v40 = vpack.c.bf16 %v738_v39, %v736_v38 }
 0x1d8   :  { %672 = vmatmul.mubr.bf16.vlgmr.msra.gmra.mxu0 %v295_v40 }
 0x298   :  { %v384_v48 = vpop.f32.mrf.mxu0 }
 0x299   :  { %v385_v49 = vadd.f32 %v582_v47, %v384_v48 }
 0x29a   :  { %v673_v50 = vpop.f32.mrf.mxu0 }
 0x29b   :  { %739 = vtanh.f32 %v385_v49 }
 0x29c   :  { %v387_v51 = vpop.f32.mrf.mxu0 }
 0x29d   :  { %v388_v52 = vadd.f32 %v582_v47, %v387_v51 }
 0x29e   :  { %v674_v53 = vpop.f32.mrf.mxu0 }
 0x29f   :  { %741 = vtanh.f32 %v388_v52 }
 0x2a8   :  { %v740_v54 = vpop.eup %739 }
 0x2ac   :  { %v742_v55 = vpop.eup %741 }
 0x2ad   :  { %v393_v56 = vpack.c.bf16 %v742_v55, %v740_v54 }
 0x2af   :  { %692 = vmatmul.mubr.bf16.vlgmr.msra.gmra.mxu1 %v393_v56 }
 0x36f   :  { %v482_v60 = vpop.f32.mrf.mxu1 }
 0x370   :  { %v483_v61 = vadd.f32 %v591_v59, %v482_v60 }
 0x371   :  { %v693_v62 = vpop.f32.mrf.mxu1 }
 0x372   :  { %v492_v63 = vsel %vm491_vm2, %v483_v61, -inf  ;;  %v533_v31 = vsel %vm532_vm5, %v483_v61, 0.0 }
 0x373   :  { %494 = vmax.xlane.f32.xlu0 %v492_v63  ;;  %v485_v0 = vpop.f32.mrf.mxu1 }
 0x374   :  { %v486_v1 = vadd.f32 %v591_v59, %v485_v0 }
 0x375   :  { %v694_v2 = vpop.f32.mrf.mxu1 }
 0x376   :  { %v493_v3 = vsel %vm491_vm2, %v486_v1, -inf  ;;  %v534_v32 = vsel %vm532_vm5, %v486_v1, 0.0 }
 0x377   :  { %496 = vmax.xlane.f32.xlu0 %v493_v3 }
 0x38d   :  { %519 = vperm.xlu0 %703, %v516_v4  }
 0x3fc   :  { %v495_v6 = vpop.xlane.xlu0 %494 }
 0x3fd   :  { %v498_v7 = vsub.f32 %v492_v63, %v495_v6 }
 0x3ff   :  { %v500_v8 = vmul.f32 1.442695, %v498_v7 }
 0x400   :  { %v497_v9 = vpop.xlane.xlu0 %496 }
 0x401   :  { %743 = vpow2.f32 %v500_v8  ;;  %v499_v10 = vsub.f32 %v493_v3, %v497_v9 }
 0x403   :  { %v502_v11 = vmul.f32 1.442695, %v499_v10 }
 0x405   :  { %745 = vpow2.f32 %v502_v11 }
 0x408   :  { %v520_v23 = vpop.permute.xlu0 %519 }
 0x409   :  { %vm524_vm3 = vcmp.eq.s32.totalorder %v939_v58, %v520_v23 }
 0x40e   :  { %v744_v12 = vpop.eup %743 }
 0x40f   :  { %504 = vadd.xlane.f32.xlu1 %v744_v12 }
 0x412   :  { %v746_v13 = vpop.eup %745 }
 0x413   :  { %506 = vadd.xlane.f32.xlu1 %v746_v13 }
 0x424   :  { %522 = vperm.xlu1 %704, %v517_v14  }
 0x498   :  { %v505_v15 = vpop.xlane.xlu1 %504 }
 0x499   :  { %747 = vlog2.f32 %v505_v15 }
 0x49c   :  { %v507_v16 = vpop.xlane.xlu1 %506 }
 0x49d   :  { %749 = vlog2.f32 %v507_v16 }
 0x49e   :  { %751 = vrcp.f32 %v505_v15 }
 0x49f   :  { %753 = vrcp.f32 %v507_v16 }
 0x4a0   :  { %v523_v27 = vpop.permute.xlu1 %522 }
 0x4a1   :  { %vm525_vm4 = vcmp.eq.s32.totalorder %v939_v58, %v523_v27 }
 0x4a6   :  { %v748_v17 = vpop.eup %747 }
 0x4a7   :  { %v509_v18 = vmul.f32 0.6931472, %v748_v17 }
 0x4a9   :  { %v512_v19 = vadd.f32 %v509_v18, %v495_v6 }
 0x4aa   :  { %v750_v20 = vpop.eup %749 }
 0x4ab   :  { %v511_v21 = vmul.f32 0.6931472, %v750_v20  ;;  %v514_v22 = vsub.f32 %v483_v61, %v512_v19  ;;  %v752_v38 = vpop.eup %751 }
 0x4ac   :  { %v754_v45 = vpop.eup %753 }
 0x4ad   :  { %v539_v24 = vmul.f32 %v744_v12, %v514_v22  ;;  %v513_v25 = vadd.f32 %v511_v21, %v497_v9  ;;  %v526_v29 = vsel %vm524_vm3, %v514_v22, 0.0 }
 0x4af   :  { %541 = vadd.xlane.f32.xlu1 %v539_v24  ;;  %v515_v26 = vsub.f32 %v486_v1, %v513_v25 }
 0x4b1   :  { %v540_v28 = vmul.f32 %v746_v13, %v515_v26  ;;  %v527_v30 = vsel %vm525_vm4, %v515_v26, 0.0 }
 0x4b3   :  { %543 = vadd.xlane.f32.xlu0 %v540_v28  ;;  %528 = vadd.xlane.f32.xlu1 %v526_v29 }
 0x4b7   :  { %530 = vadd.xlane.f32.xlu1 %v527_v30 }
 0x4bb   :  { %535 = vadd.xlane.f32.xlu1 %v533_v31 }
 0x4bf   :  { %537 = vadd.xlane.f32.xlu1 %v534_v32 }
 0x538   :  { %v542_v33 = vpop.xlane.xlu1 %541 }
 0x539   :  { %v545_v35 = vsub.f32 0.0, %v542_v33 }
 0x53b   :  { %v548_v39 = vmul.f32 %v752_v38, %v545_v35 }
 0x53c   :  { %v529_v34 = vpop.xlane.xlu1 %528  ;;  %v544_v37 = vpop.xlane.xlu0 %543 }
 0x53d   :  { %v552_v40 = vsel %vm551_vm6, %v529_v34, 0.0  ;;  %v546_v41 = vsub.f32 0.0, %v544_v37 }
 0x53f   :  { %v550_v46 = vmul.f32 %v754_v45, %v546_v41 }
 0x540   :  { %v531_v36 = vpop.xlane.xlu1 %530 }
 0x541   :  { %v553_v47 = vsel %vm551_vm6, %v531_v36, 0.0 }
 0x544   :  { %v536_v42 = vpop.xlane.xlu1 %535 }
 0x545   :  { %v555_v43 = vsel %vm554_vm7, %v536_v42, %v552_v40 }
 0x546   :  { %v558_v44 = vsel %vm557_vm8, %v548_v39, %v555_v43 }
 0x547   :  { %561 = vst.msk [vmem:[%s973_s10] sm:$0xff] %vm560_vm9, %v558_v44 }
 0x548   :  { %v538_v48 = vpop.xlane.xlu1 %537 }
 0x549   :  { %v556_v49 = vsel %vm554_vm7, %v538_v48, %v553_v47 }
 0x54a   :  { %v559_v50 = vsel %vm557_vm8, %v550_v46, %v556_v49 }
 0x54b   :  { %562 = vst.msk [vmem:[%s973_s10 + $0x8] sm:$0xff] %vm560_vm9, %v559_v50 }
 0x54c   :  { %567 = vsyncpa [#allocation3], 1 }
 0x54d   :  { %568 = vsyncpa [#allocation5], 1 }

</bundles_post_ra>
